<compile_context>
chip_gen: v7x
topology: tpu7x:2x2x1
jax: 0.10.0
libtpu: 0.0.40
codegen_flags: <defaults>
</compile_context>

<pallas_src>
import functools

import jax
import jax.numpy as jnp
from jax.experimental import pallas as pl
from jax.experimental.pallas import tpu as pltpu


def planar_flow_kernel(zT_ref, params_ref, scalars_ref, znewT_ref, logdet_ref):
    # scalars_ref (SMEM): [b, <w, u_hat>]
    b = scalars_ref[0]
    w_dot_uhat = scalars_ref[1]

    zT = zT_ref[...].astype(jnp.float32)          # (D, TB)  streamed, lane-dense
    params = params_ref[...].astype(jnp.float32)  # (D, 2)   resident: [w | u_hat]
    w = params[:, 0:1]                            # (D, 1)
    u_hat = params[:, 1:2]                        # (D, 1)

    # linear = w . z + b per column -> (1, TB) lane-dense (VPU mul + sublane reduce)
    linear = jnp.sum(zT * w, axis=0, keepdims=True) + b
    activation = jnp.tanh(linear)                 # (1, TB) lane-dense EUP

    # z_new^T = z^T + u_hat * tanh(linear)   (full-width vreg VPU work)
    znewT_ref[...] = (zT + u_hat * activation).astype(znewT_ref.dtype)

    # det_jacobian = 1 + (1 - tanh^2) * <w, u_hat>   (psi tensor eliminated)
    det = 1.0 + (1.0 - activation * activation) * w_dot_uhat          # (1, TB)
    logdet_ref[...] = jnp.log(jnp.abs(det) + 1e-8).astype(logdet_ref.dtype)


def _choose_block_cols(B, per_col_bytes, *, target_bytes=2 << 20, min_steps=8):
    """Pick the batch tile width (lane axis): byte-budgeted, multiple of 128."""
    if B <= 128:
        return B                                   # single full-width block
    tb = max(128, (target_bytes // per_col_bytes) // 128 * 128)
    # Keep >= min_steps grid steps so "parallel" can split across v7x's 2 TCs.
    steps_cap = ((-(-B // min_steps)) + 127) // 128 * 128
    return min(tb, max(128, steps_cap))


def planar_flow(z, w, u, b, *, block_cols=None):
    """z: (B, D), w: (1, D), u: (1, D), b: (1,) -> (z_new (B, D), log_det (B,))."""
    B, D = z.shape

    # ---- hoisted, batch-invariant parameter math (runs once, outside the grid) ----
    w32 = w.astype(jnp.float32)
    u32 = u.astype(jnp.float32)
    wu = jnp.sum(w32 * u32)
    mwu = -1.0 + jax.nn.softplus(wu)
    w_norm_sq = jnp.sum(w32 * w32)
    u_hat = u32 + (mwu - wu) * w32 / (w_norm_sq + 1e-8)          # (1, D)
    w_dot_uhat = jnp.sum(w32 * u_hat)                            # scalar
    params = jnp.concatenate([w32.T, u_hat.T], axis=1)           # (D, 2) resident VMEM
    scalars = jnp.stack(
        [b.reshape(()).astype(jnp.float32), w_dot_uhat])         # (2,) -> SMEM

    # ---- lane-dense layout: batch on the 128-lane axis (layout plumbing) ----
    zT = jnp.transpose(z)                                        # (D, B)

    # ---- tile width: byte budget, multiple of 128, ragged tail handled by Pallas ----
    per_col_bytes = 2 * D * z.dtype.itemsize + 4                 # z in + z_new out + logdet
    if block_cols is None:
        tb = _choose_block_cols(B, per_col_bytes)
    else:
        tb = int(block_cols)
    if tb >= B:
        tb = B                                                   # full-dim block is always legal
    else:
        tb = max(128, tb // 128 * 128)                           # lane multiple for partial blocks
        if tb >= B:
            tb = B
    grid = (pl.cdiv(B, tb),)                                     # no jnp.pad HBM copy

    # Explicit scoped-VMEM budget (double-buffered streams), v7x/v5e safe.
    streamed = 2 * tb * per_col_bytes
    vmem_limit = int(max(streamed + (2 << 20), 8 << 20))

    z_newT, log_det2d = pl.pallas_call(
        planar_flow_kernel,
        grid=grid,
        in_specs=[
            pl.BlockSpec((D, tb), lambda i: (0, i)),             # z^T tile (streamed)
            pl.BlockSpec((D, 2), lambda i: (0, 0)),              # [w | u_hat] (resident)
            pl.BlockSpec(memory_space=pltpu.MemorySpace.SMEM),   # [b, <w,u_hat>]
        ],
        out_specs=(
            pl.BlockSpec((D, tb), lambda i: (0, i)),             # z_new^T
            pl.BlockSpec((1, tb), lambda i: (0, i)),             # log_det (lane-dense)
        ),
        out_shape=(
            jax.ShapeDtypeStruct((D, B), z.dtype),
            jax.ShapeDtypeStruct((1, B), jnp.float32),
        ),
        compiler_params=pltpu.CompilerParams(
            dimension_semantics=("parallel",),
            vmem_limit_bytes=vmem_limit,
        ),
    )(zT, params, scalars)

    z_new = jnp.transpose(z_newT)                                # back to (B, D)
    log_det = log_det2d.reshape(B)
    return z_new, log_det


def planar_flow_ref(z, w, u, b):
    """Pure-JAX reference mirroring the PyTorch forward."""
    linear = z @ w.T + b                                         # (B, 1)
    activation = jnp.tanh(linear)
    wu = w @ u.T                                                 # (1, 1)
    mwu = -1.0 + jax.nn.softplus(wu)
    u_hat = u + (mwu - wu) * w / (jnp.sum(w * w) + 1e-8)
    z_new = z + u_hat * activation
    psi = (1.0 - jnp.tanh(linear) ** 2) * w
    det_jacobian = 1.0 + psi @ u_hat.T
    log_det = jnp.log(jnp.abs(det_jacobian) + 1e-8).squeeze(-1)
    return z_new, log_det


def _check(z_new, log_det, z_new_ref, log_det_ref):
    # Primary output: tight elementwise check.
    assert jnp.allclose(z_new, z_new_ref, atol=1e-5, rtol=1e-5)
    # log(|det|+1e-8) is ill-conditioned where det -> 0: a ~1e-6 absolute f32
    # difference (pure summation-order noise) becomes a large log difference.
    # So check the well-conditioned det-domain quantity tightly, and the log
    # domain with the propagated-uncertainty bound  |dlog| <= atol_det / det.
    det = jnp.exp(log_det)          # recovers |det_jacobian| + 1e-8
    det_ref = jnp.exp(log_det_ref)
    assert jnp.allclose(det, det_ref, atol=1e-4, rtol=1e-4)
    log_tol = 1e-3 + 1e-4 / det_ref
    assert bool(jnp.all(jnp.abs(log_det - log_det_ref) <= log_tol))


if __name__ == "__main__":
    key = jax.random.PRNGKey(0)
    kz, ku, kw, kb = jax.random.split(key, 4)

    # ---- primary small-shape check (matches the module's expected usage) ----
    batch, latent_dim = 8, 16
    z = jax.random.normal(kz, (batch, latent_dim), dtype=jnp.float32)
    u = jax.random.normal(ku, (1, latent_dim), dtype=jnp.float32)
    w = jax.random.normal(kw, (1, latent_dim), dtype=jnp.float32)
    b = jax.random.normal(kb, (1,), dtype=jnp.float32)

    z_new, log_det = planar_flow(z, w, u, b)
    jax.block_until_ready((z_new, log_det))
    z_new_ref, log_det_ref = planar_flow_ref(z, w, u, b)
    assert z_new.shape == (batch, latent_dim)
    assert log_det.shape == (batch,)
    _check(z_new, log_det, z_new_ref, log_det_ref)

    # ---- multi-tile grid + ragged trailing block (no jnp.pad copy of z) ----
    z2 = jax.random.normal(jax.random.fold_in(kz, 1), (300, latent_dim), jnp.float32)
    z2_new, log_det2 = planar_flow(z2, w, u, b, block_cols=128)
    jax.block_until_ready((z2_new, log_det2))
    z2_new_ref, log_det2_ref = planar_flow_ref(z2, w, u, b)
    assert z2_new.shape == (300, latent_dim)
    assert log_det2.shape == (300,)
    _check(z2_new, log_det2, z2_new_ref, log_det2_ref)

    # ---- auto tile-size path (divisible batch, several grid steps) ----
    z3 = jax.random.normal(jax.random.fold_in(kz, 2), (1024, latent_dim), jnp.float32)
    z3_new, log_det3 = planar_flow(z3, w, u, b)
    jax.block_until_ready((z3_new, log_det3))
    z3_new_ref, log_det3_ref = planar_flow_ref(z3, w, u, b)
    assert z3_new.shape == (1024, latent_dim)
    assert log_det3.shape == (1024,)
    _check(z3_new, log_det3, z3_new_ref, log_det3_ref)

    print("KERNEL_OK")
</pallas_src>

<mosaic_0001>
module attributes {stable_mosaic.version = 11 : i64} {
  func.func @planar_flow_kernel(%arg0: i32, %arg1: memref<16x8xf32, #tpu.memory_space<vmem>>, %arg2: memref<16x2xf32, #tpu.memory_space<vmem>>, %arg3: memref<2xf32, #tpu.memory_space<smem>>, %arg4: memref<16x8xf32, #tpu.memory_space<vmem>>, %arg5: memref<1x8xf32, #tpu.memory_space<vmem>>) attributes {dimension_semantics = [#tpu.dimension_semantics<parallel>], iteration_bounds = array<i64: 1>, scalar_prefetch = 0 : i64, scratch_operands = 0 : i64, tpu.core_type = #tpu.core_type<tc>, window_params = [{transform_indices = @transform_0, window_bounds = array<i64: 16, 8>}, {pipeline_mode = #tpu.pipeline_mode<synchronous>, transform_indices = @transform_1, window_bounds = array<i64: 16, 2>}, {transform_indices = @transform_2, window_bounds = array<i64: 2>}, {transform_indices = @transform_3, window_bounds = array<i64: 16, 8>}, {transform_indices = @transform_4, window_bounds = array<i64: 1, 8>}]} {
    %c0 = arith.constant 0 : index
    %0 = memref.load %arg3[%c0] : memref<2xf32, #tpu.memory_space<smem>>
    %c1 = arith.constant 1 : index
    %1 = memref.load %arg3[%c1] : memref<2xf32, #tpu.memory_space<smem>>
    %c0_0 = arith.constant 0 : index
    %c0_1 = arith.constant 0 : index
    %2 = vector.load %arg1[%c0_0, %c0_1] : memref<16x8xf32, #tpu.memory_space<vmem>>, vector<16x8xf32>
    %c0_2 = arith.constant 0 : index
    %c0_3 = arith.constant 0 : index
    %3 = vector.load %arg2[%c0_2, %c0_3] : memref<16x2xf32, #tpu.memory_space<vmem>>, vector<16x2xf32>
    %4 = vector.extract_strided_slice %3 {offsets = [0, 0], sizes = [16, 1], strides = [1, 1]} : vector<16x2xf32> to vector<16x1xf32>
    %5 = vector.extract_strided_slice %3 {offsets = [0, 1], sizes = [16, 1], strides = [1, 1]} : vector<16x2xf32> to vector<16x1xf32>
    %6 = vector.broadcast %4 : vector<16x1xf32> to vector<16x8xf32>
    %7 = arith.mulf %2, %6 : vector<16x8xf32>
    %cst = arith.constant dense<0.000000e+00> : vector<8xf32>
    %8 = vector.multi_reduction <add>, %7, %cst [0] : vector<16x8xf32> to vector<8xf32>
    %9 = vector.shape_cast %8 : vector<8xf32> to vector<1x8xf32>
    %10 = vector.broadcast %0 : f32 to vector<1x8xf32>
    %11 = arith.addf %9, %10 : vector<1x8xf32>
    %12 = math.tanh %11 : vector<1x8xf32>
    %13 = vector.broadcast %5 : vector<16x1xf32> to vector<16x8xf32>
    %14 = vector.broadcast %12 : vector<1x8xf32> to vector<16x8xf32>
    %15 = arith.mulf %13, %14 : vector<16x8xf32>
    %16 = arith.addf %2, %15 : vector<16x8xf32>
    %c0_4 = arith.constant 0 : index
    %c0_5 = arith.constant 0 : index
    %17 = vector.load %arg4[%c0_4, %c0_5] : memref<16x8xf32, #tpu.memory_space<vmem>>, vector<16x8xf32>
    tpu.vector_store %arg4[%c0_4, %c0_5], %16 {strides = array<i32>} : memref<16x8xf32, #tpu.memory_space<vmem>>, vector<16x8xf32>,
    %18 = arith.mulf %12, %12 : vector<1x8xf32>
    %cst_6 = arith.constant 1.000000e+00 : f32
    %19 = vector.broadcast %cst_6 : f32 to vector<1x8xf32>
    %20 = arith.subf %19, %18 : vector<1x8xf32>
    %21 = vector.broadcast %1 : f32 to vector<1x8xf32>
    %22 = arith.mulf %20, %21 : vector<1x8xf32>
    %cst_7 = arith.constant 1.000000e+00 : f32
    %23 = vector.broadcast %cst_7 : f32 to vector<1x8xf32>
    %24 = arith.addf %23, %22 : vector<1x8xf32>
    %25 = math.absf %24 : vector<1x8xf32>
    %cst_8 = arith.constant 9.99999993E-9 : f32
    %26 = vector.broadcast %cst_8 : f32 to vector<1x8xf32>
    %27 = arith.addf %25, %26 : vector<1x8xf32>
    %28 = math.log %27 : vector<1x8xf32>
    %c0_9 = arith.constant 0 : index
    %c0_10 = arith.constant 0 : index
    %29 = vector.load %arg5[%c0_9, %c0_10] : memref<1x8xf32, #tpu.memory_space<vmem>>, vector<1x8xf32>
    tpu.vector_store %arg5[%c0_9, %c0_10], %28 {strides = array<i32>} : memref<1x8xf32, #tpu.memory_space<vmem>>, vector<1x8xf32>,
    return
  }
  func.func @transform_0(%arg0: i32) -> (i32, i32) {
    %c0_i32 = arith.constant 0 : i32
    %c0_i32_0 = arith.constant 0 : i32
    return %c0_i32, %arg0 : i32, i32
  }
  func.func @transform_1(%arg0: i32) -> (i32, i32) {
    %c0_i32 = arith.constant 0 : i32
    %c0_i32_0 = arith.constant 0 : i32
    %c0_i32_1 = arith.constant 0 : i32
    return %c0_i32, %c0_i32_0 : i32, i32
  }
  func.func @transform_2(%arg0: i32) -> i32 {
    %c0_i32 = arith.constant 0 : i32
    %c0_i32_0 = arith.constant 0 : i32
    return %c0_i32 : i32
  }
  func.func @transform_3(%arg0: i32) -> (i32, i32) {
    %c0_i32 = arith.constant 0 : i32
    %c0_i32_0 = arith.constant 0 : i32
    return %c0_i32, %arg0 : i32, i32
  }
  func.func @transform_4(%arg0: i32) -> (i32, i32) {
    %c0_i32 = arith.constant 0 : i32
    %c0_i32_0 = arith.constant 0 : i32
    return %c0_i32, %arg0 : i32, i32
  }
}

</mosaic_0001>

<bundles_post_ra>
// kernel: tpu_custom_call.1
= control target key start
LH: loop header
LB: loop body
LE: loop exit
PB: predicated region body
PF: predicated region fallthrough
CT: control target
= control target key end

     0   :  { %10 = vsyncpa [#allocation4], 0  ;;  %s221_s0 = inlined_call_operand.vmem [shape: f32[16,8], index: 0, kind: input, shape index: {}]   ;;  %s222_s1 = inlined_call_operand.vmem [shape: f32[16,2], index: 1, kind: input, shape index: {}]   ;;  %s223_s2 = inlined_call_operand.vmem [shape: f32[2], index: 2, kind: input, shape index: {}]   ;;  %s224_s3 = inlined_call_operand.vmem [shape: f32[16,8], index: 3, kind: output, shape index: {0}]   ;;  %s225_s4 = inlined_call_operand.hbm [shape: f32[1,8], index: 4, kind: output, shape index: {1}]  }
   0x1   :  { %11 = vsyncpa [#allocation3], 0  ;;  %s22_s17 = sshll.u32 %s223_s2, 4  ;;  %s23_s17 = int_to_ptr.vmem [resolvable:$true] %s22_s17 }
   0x2   :  { %s117_s18 = scalar_lea.vmem %s23_s17, 16  ;;  %p122_p1 = scmp.lt.s32.totalorder %s23_s17, %s23_s17 }
   0x3   :  { %p118_p0 = scmp.ne.s32.totalorder %s23_s17, %s117_s18  ;;  %p123_p2 = scmp.lt.s32.totalorder %s117_s18, %s117_s18 }
   0x5   :  { %p124_p3 = por %p123_p2, %p122_p1 }
   0x7   :  { %p125_p4 = pnand %p124_p3, %p118_p0 }
   0x9   :  { %128 = shalt.err (!%p125_p4)
}
   0xa   :  { %s155_s19 = smov [#allocation2]  }
   0xb   :  { %25 = dma.vmem_to_smem %s23_s17, 16, %s155_s19, [#allocation4]  }
   0xc   :  { %151 = dma.done.wait [#allocation4], 16  }
   0xd   :  { %152 = vsyncadd [#allocation4], 4294967280 }
   0xe   :  { %29 = sfence }
   0xf   :  { %v34_v0 = vld [vmem:[%s222_s1] sm:$0xff]  ;;  %v156_v1 = vmov 0   ;;  %v157_v2 = vmov 1   ;;  %v35_v3 = vld [vmem:[%s222_s1 + $0x8] sm:$0xff]  ;;  %vm48_vm0 = vcmask 64512   ;;  %s30_s1 = sld [smem:[#allocation2]] }
  0x10   :  { %110 = vset.pattern.permute.xlu0 %v156_v1  ;;  %111 = vset.pattern.permute.xlu1 %v157_v2  ;;  %v32_v5 = vld [vmem:[%s221_s0] sm:$0xff]  ;;  %v33_v6 = vld [vmem:[%s221_s0 + $0x8] sm:$0xff]  ;;  %s105_s0 = sld [smem:[#allocation2 + $0x1]]  ;;  %s158_s5 = smov [#allocation5]   ;;  %vm84_vm1 = vcmask 57344  }
  0x11   :  { %38 = vperm.xlu0 %110, %v34_v0   ;;  %62 = vperm.xlu1 %111, %v34_v0   ;;  %s94_s6 = sshll.u32 %s158_s5, 4  ;;  %s95_s6 = int_to_ptr.vmem [resolvable:$true] %s94_s6 }
  0x12   :  { %s129_s7 = scalar_lea.vmem %s95_s6, 16  ;;  %s133_s8 = scalar_lea.vmem %s95_s6, 32 }
  0x13   :  { %p130_p5 = scmp.ne.s32.totalorder %s95_s6, %s129_s7  ;;  %p134_p6 = scmp.lt.s32.totalorder %s95_s6, %s95_s6 }
  0x14   :  { %p135_p7 = scmp.lt.s32.totalorder %s133_s8, %s129_s7 }
  0x15   :  { %43 = vperm.xlu0 %110, %v35_v3   ;;  %66 = vperm.xlu1 %111, %v35_v3   ;;  %v58_v18 = vstv %s30_s1 }
  0x16   :  { %v77_v27 = vstv %s105_s0  ;;  %p136_p8 = por %p135_p7, %p134_p6 }
  0x18   :  { %p137_p9 = pnand %p136_p8, %p130_p5 }
  0x19   :  { %112 = vset.pattern.permute.xlu0 %v157_v2 }
  0x90   :  { %v39_v4 = vpop.permute.xlu0 %38  ;;  %v63_v21 = vpop.permute.xlu1 %62 }
  0x91   :  { %v46_v7 = vmul.f32 %v39_v4, %v32_v5 }
  0x93   :  { %v49_v10 = vsel %vm48_vm0, %v46_v7, 0.0 }
  0x94   :  { %v44_v8 = vpop.permute.xlu0 %43  ;;  %v67_v22 = vpop.permute.xlu1 %66 }
  0x95   :  { %v47_v9 = vmul.f32 %v44_v8, %v33_v6 }
  0x97   :  { %v50_v11 = vsel %vm48_vm0, %v47_v9, 0.0 }
  0x98   :  { %v51_v12 = vadd.f32 %v50_v11, %v49_v10 }
  0x9a   :  { %v52_v13 = vrot.slane %v51_v12, 4 }
  0x9c   :  { %v53_v14 = vadd.f32 %v52_v13, %v51_v12 }
  0x9e   :  { %v54_v15 = vrot.slane %v53_v14, 2 }
  0xa0   :  { %v55_v16 = vadd.f32 %v54_v15, %v53_v14 }
  0xa2   :  { %v56_v17 = vrot.slane %v55_v16, 1 }
  0xa4   :  { %v57_v19 = vadd.f32 %v56_v17, %v55_v16 }
  0xa6   :  { %v59_v20 = vadd.f32 %v58_v18, %v57_v19 }
  0xa8   :  { %113 = vtanh.f32 %v59_v20 }
  0xb2   :  { %v114_v23 = vpop.eup %113 }
  0xb3   :  { %v69_v24 = vmul.f32 %v114_v23, %v63_v21  ;;  %v70_v25 = vmul.f32 %v114_v23, %v67_v22  ;;  %v75_v26 = vmul.f32 %v114_v23, %v114_v23 }
  0xb5   :  { %v71_v28 = vadd.f32 %v69_v24, %v32_v5  ;;  %v72_v29 = vadd.f32 %v70_v25, %v33_v6  ;;  %v76_v30 = vsub.f32 1.0, %v75_v26 }
  0xb7   :  { %73 = vst.msk [vmem:[%s224_s3] sm:$0xff] %vm48_vm0, %v71_v28  ;;  %74 = vst.msk [vmem:[%s224_s3 + $0x8] sm:$0xff] %vm48_vm0, %v72_v29  ;;  %v78_v31 = vmul.f32 %v77_v27, %v76_v30 }
  0xb9   :  { %v79_v32 = vadd.f32 1.0, %v78_v31 }
  0xbb   :  { %v80_v33 = vand.u32 2147483647, %v79_v32 }
  0xbd   :  { %v81_v34 = vadd.f32 1e-08, %v80_v33 }
  0xbf   :  { %115 = vlog2.f32 %v81_v34 }
  0xc9   :  { %v116_v35 = vpop.eup %115 }
  0xca   :  { %v83_v36 = vmul.f32 0.6931472, %v116_v35 }
  0xcc   :  { %85 = vst.msk [vmem:[#allocation5] sm:$0x1] %vm84_vm1, %v83_v36 }
  0xcd   :  { %140 = shalt.err (!%p137_p9)
}
  0xce   :  { %s141_s10 = scalar_lea.hbm %s225_s4, 16 }
  0xcf   :  { %p142_p10 = scmp.ne.s32.totalorder %s225_s4, %s141_s10  ;;  %p145_p11 = scmp.lt.u32.totalorder %s141_s10, %s225_s4 }
  0xd1   :  { %p147_p12 = pnand %p145_p11, %p142_p10 }
  0xd3   :  { %150 = shalt.err (!%p147_p12)
}
  0xd4   :  { %97 = dma.vmem_to_hbm [thread:$0]  %s95_s6, 16, %s225_s4, [#allocation3]  }
  0xd5   :  { %153 = dma.done.wait [#allocation3], 16  }
  0xd6   :  { %154 = vsyncadd [#allocation3], 4294967280 }
  0xd7   :  { %103 = vsyncpa [#allocation3], 1 }
  0xd8   :  { %104 = vsyncpa [#allocation4], 1 }

</bundles_post_ra>
